<compile_context>
chip_gen: v7x
topology: tpu7x:2x2x1
jax: 0.10.0
libtpu: 0.0.40
codegen_flags: <defaults>
</compile_context>

<pallas_src>
import functools

import jax
import jax.numpy as jnp
from jax.experimental import pallas as pl
from jax.experimental.pallas import tpu as pltpu


# ---------------------------------------------------------------------------
# small helpers
# ---------------------------------------------------------------------------

def _choose_tile(dim, pref, quantum):
    """Largest tile <= pref that divides `dim` and is a multiple of `quantum`.

    Falls back to the full dim when the dim is small or not quantum-aligned.
    (At real RoBERTa shapes H=768 contractions get tk == K, i.e. no K axis;
    at the tiny demo shapes every dim fits in a single block.)
    """
    if dim <= pref or dim % quantum != 0:
        return dim
    t = (pref // quantum) * quantum
    while dim % t != 0:
        t -= quantum
    return t


def _gelu(x):
    """Exact (erf-based) GELU as used by HF RoBERTa, built only from
    Mosaic-friendly ops (Abramowitz-Stegun 7.1.26 erf, |err| < 1.5e-7)."""
    z = jnp.abs(x) * 0.7071067811865475
    t = 1.0 / (1.0 + 0.3275911 * z)
    poly = t * (0.254829592 + t * (-0.284496736 + t * (1.421413741
               + t * (-1.453152027 + t * 1.061405429))))
    erf_abs = 1.0 - poly * jnp.exp(-z * z)
    erf = jnp.where(x >= 0.0, erf_abs, -erf_abs)
    return 0.5 * x * (1.0 + erf)


# ---------------------------------------------------------------------------
# Tiled linear:  y = act(x @ w + b)
#   bf16 operands, f32 accumulation.  When out_dtype is f32 the resident
#   output block itself is the accumulator (no duplicate VMEM scratch).
# ---------------------------------------------------------------------------

def _linear_kernel(x_ref, w_ref, b_ref, o_ref, *scratch,
                   activation, acc_in_out):
    acc_ref = o_ref if acc_in_out else scratch[0]

    @pl.when(pl.program_id(2) == 0)
    def _init():
        acc_ref[...] = jnp.zeros_like(acc_ref)

    acc_ref[...] += jnp.dot(x_ref[...], w_ref[...],
                            preferred_element_type=jnp.float32)

    @pl.when(pl.program_id(2) == pl.num_programs(2) - 1)
    def _finalize():
        y = acc_ref[...].astype(jnp.float32) + b_ref[...]
        if activation == "gelu":
            y = _gelu(y)
        o_ref[...] = y.astype(o_ref.dtype)


def linear(x, w, b, activation=None, out_dtype=jnp.bfloat16,
           tm=512, tn=1024, tk=1024):
    """Tiled bf16 matmul + bias (+ optional exact GELU epilogue)."""
    M, K = x.shape
    K2, N = w.shape
    assert K == K2
    tm = _choose_tile(M, tm, 8)
    tn = _choose_tile(N, tn, 128)
    tk = _choose_tile(K, tk, 128)
    grid = (M // tm, N // tn, K // tk)
    acc_in_out = (out_dtype == jnp.float32)

    cost = pl.CostEstimate(
        flops=2 * M * N * K,
        transcendentals=M * N if activation == "gelu" else 0,
        bytes_accessed=2 * M * K + 2 * K * N + 2 * M * N,
    )
    return pl.pallas_call(
        functools.partial(_linear_kernel, activation=activation,
                          acc_in_out=acc_in_out),
        out_shape=jax.ShapeDtypeStruct((M, N), out_dtype),
        grid=grid,
        in_specs=[
            pl.BlockSpec((tm, tk), lambda i, j, k: (i, k)),
            pl.BlockSpec((tk, tn), lambda i, j, k: (k, j)),
            pl.BlockSpec((1, tn), lambda i, j, k: (0, j)),
        ],
        out_specs=pl.BlockSpec((tm, tn), lambda i, j, k: (i, j)),
        scratch_shapes=([] if acc_in_out
                        else [pltpu.VMEM((tm, tn), jnp.float32)]),
        compiler_params=pltpu.CompilerParams(
            dimension_semantics=("parallel", "parallel", "arbitrary")),
        cost_estimate=cost,
    )(x.astype(jnp.bfloat16), w.astype(jnp.bfloat16),
      b.reshape(1, N).astype(jnp.float32))


# ---------------------------------------------------------------------------
# Tiled linear fused with residual-add + LayerNorm epilogue
#   y = LayerNorm(x @ w + b + residual)     (output width = full N, bf16)
# ---------------------------------------------------------------------------

def _linear_res_ln_kernel(x_ref, w_ref, b_ref, r_ref, g_ref, beta_ref,
                          o_ref, acc_ref):
    @pl.when(pl.program_id(1) == 0)
    def _init():
        acc_ref[...] = jnp.zeros_like(acc_ref)

    acc_ref[...] += jnp.dot(x_ref[...], w_ref[...],
                            preferred_element_type=jnp.float32)

    @pl.when(pl.program_id(1) == pl.num_programs(1) - 1)
    def _finalize():
        y = acc_ref[...] + b_ref[...] + r_ref[...].astype(jnp.float32)
        mu = jnp.mean(y, axis=-1, keepdims=True)
        var = jnp.mean(jnp.square(y - mu), axis=-1, keepdims=True)
        yn = (y - mu) * jax.lax.rsqrt(var + 1e-5)
        o_ref[...] = (yn * g_ref[...] + beta_ref[...]).astype(o_ref.dtype)


def linear_res_ln(x, w, b, residual, gamma, beta, tm=512, tk=1024):
    M, K = x.shape
    N = w.shape[1]
    tm = _choose_tile(M, tm, 8)
    tk = _choose_tile(K, tk, 128)
    grid = (M // tm, K // tk)

    cost = pl.CostEstimate(
        flops=2 * M * N * K + 6 * M * N,
        transcendentals=M,
        bytes_accessed=2 * M * K + 2 * K * N + 4 * M * N,
    )
    return pl.pallas_call(
        _linear_res_ln_kernel,
        out_shape=jax.ShapeDtypeStruct((M, N), jnp.bfloat16),
        grid=grid,
        in_specs=[
            pl.BlockSpec((tm, tk), lambda i, k: (i, k)),
            pl.BlockSpec((tk, N), lambda i, k: (k, 0)),
            pl.BlockSpec((1, N), lambda i, k: (0, 0)),
            pl.BlockSpec((tm, N), lambda i, k: (i, 0)),   # residual (bf16)
            pl.BlockSpec((1, N), lambda i, k: (0, 0)),    # gamma
            pl.BlockSpec((1, N), lambda i, k: (0, 0)),    # beta
        ],
        out_specs=pl.BlockSpec((tm, N), lambda i, k: (i, 0)),
        scratch_shapes=[pltpu.VMEM((tm, N), jnp.float32)],
        compiler_params=pltpu.CompilerParams(
            dimension_semantics=("parallel", "arbitrary")),
        cost_estimate=cost,
    )(x.astype(jnp.bfloat16), w.astype(jnp.bfloat16),
      b.reshape(1, N).astype(jnp.float32),
      residual.astype(jnp.bfloat16),
      gamma.reshape(1, N).astype(jnp.float32),
      beta.reshape(1, N).astype(jnp.float32))


# ---------------------------------------------------------------------------
# Standalone LayerNorm (embedding output, LM-head transform)
# ---------------------------------------------------------------------------

def _layernorm_kernel(x_ref, g_ref, b_ref, o_ref):
    x = x_ref[...].astype(jnp.float32)
    mu = jnp.mean(x, axis=-1, keepdims=True)
    var = jnp.mean(jnp.square(x - mu), axis=-1, keepdims=True)
    yn = (x - mu) * jax.lax.rsqrt(var + 1e-5)
    o_ref[...] = (yn * g_ref[...] + b_ref[...]).astype(o_ref.dtype)


def layernorm(x, g, b, out_dtype=jnp.bfloat16, tm=512):
    M, H = x.shape
    tm = _choose_tile(M, tm, 8)
    return pl.pallas_call(
        _layernorm_kernel,
        out_shape=jax.ShapeDtypeStruct((M, H), out_dtype),
        grid=(M // tm,),
        in_specs=[pl.BlockSpec((tm, H), lambda i: (i, 0)),
                  pl.BlockSpec((1, H), lambda i: (0, 0)),
                  pl.BlockSpec((1, H), lambda i: (0, 0))],
        out_specs=pl.BlockSpec((tm, H), lambda i: (i, 0)),
        compiler_params=pltpu.CompilerParams(
            dimension_semantics=("parallel",)),
    )(x, g.reshape(1, H).astype(jnp.float32),
      b.reshape(1, H).astype(jnp.float32))


# ---------------------------------------------------------------------------
# Attention: grid=(batch, query-tile); all heads in-kernel; key mask broadcast
# in-kernel; per-head results stored straight into the lane-dense output
# slice (no concatenate / vreg spill).  1/sqrt(D) is pre-folded into W_q.
# ---------------------------------------------------------------------------

def _attention_kernel(mask_ref, q_ref, kv_ref, o_ref, *, n_heads):
    H = o_ref.shape[2]
    D = H // n_heads

    neg = (1.0 - mask_ref[0].astype(jnp.float32)) * -1e9   # (1, S) key bias
    q_all = q_ref[0]                                       # (tq, 3H) bf16
    kv_all = kv_ref[0]                                     # (S, 3H) bf16

    for h in range(n_heads):
        q = q_all[:, h * D:(h + 1) * D]
        k = kv_all[:, H + h * D:H + (h + 1) * D]
        v = kv_all[:, 2 * H + h * D:2 * H + (h + 1) * D]
        # s = q @ k^T  (scale already folded into q), additive key mask.
        s = jax.lax.dot_general(q, k, (((1,), (1,)), ((), ())),
                                preferred_element_type=jnp.float32) + neg
        m = jnp.max(s, axis=-1, keepdims=True)
        p = jnp.exp(s - m)
        p = p * pl.reciprocal(jnp.sum(p, axis=-1, keepdims=True), approx=True)
        ctx = jnp.dot(p.astype(kv_all.dtype), v,
                      preferred_element_type=jnp.float32)
        o_ref[0, :, h * D:(h + 1) * D] = ctx.astype(o_ref.dtype)


def attention(qkv, key_mask, n_heads, tq_pref=256):
    """qkv: (B, S, 3H) bf16 with columns [q | k | v]; key_mask: (B, 1, S)."""
    B, S, H3 = qkv.shape
    H = H3 // 3
    tq = _choose_tile(S, tq_pref, 8)
    return pl.pallas_call(
        functools.partial(_attention_kernel, n_heads=n_heads),
        out_shape=jax.ShapeDtypeStruct((B, S, H), jnp.bfloat16),
        grid=(B, S // tq),
        in_specs=[pl.BlockSpec((1, 1, S), lambda b, qi: (b, 0, 0)),
                  pl.BlockSpec((1, tq, H3), lambda b, qi: (b, qi, 0)),   # Q rows
                  pl.BlockSpec((1, S, H3), lambda b, qi: (b, 0, 0))],    # K/V
        out_specs=pl.BlockSpec((1, tq, H), lambda b, qi: (b, qi, 0)),
        compiler_params=pltpu.CompilerParams(
            dimension_semantics=("parallel", "parallel")),
    )(key_mask, qkv, qkv)


# ---------------------------------------------------------------------------
# Answer head: masked_fill(-inf) + argmax over a lane-dense candidate tile
# ---------------------------------------------------------------------------

def _answer_kernel(ans_ref, lmask_ref, out_ref, pred_ref):
    ans = jnp.where(lmask_ref[...] == 1, -jnp.inf, ans_ref[...])
    out_ref[...] = ans
    idx = jax.lax.broadcasted_iota(jnp.int32, ans.shape, 1)
    mx = jnp.max(ans, axis=-1, keepdims=True)
    pred = jnp.min(jnp.where(ans == mx, idx, ans.shape[-1]),
                   axis=-1, keepdims=True)
    pred_ref[...] = pred.astype(jnp.int32)


def mask_argmax(ans_padded, lmask_padded):
    B, KP = ans_padded.shape
    return pl.pallas_call(
        _answer_kernel,
        out_shape=(jax.ShapeDtypeStruct((B, KP), jnp.float32),
                   jax.ShapeDtypeStruct((B, 1), jnp.int32)),
    )(ans_padded, lmask_padded)


# ---------------------------------------------------------------------------
# Synthetic RoBERTa-MLM parameters + forward
# ---------------------------------------------------------------------------

def init_params(key, vocab, hidden, max_seq, n_layers, ffn, n_heads):
    d = hidden // n_heads
    scale = 1.0 / (d ** 0.5)
    keys = jax.random.split(key, 4 + n_layers)

    def nrm(k, shape):
        return jax.random.normal(k, shape, jnp.float32) * 0.02

    params = {
        "word_emb": nrm(keys[0], (vocab, hidden)),           # f32 until label init
        "pos_emb": nrm(keys[1], (max_seq, hidden)).astype(jnp.bfloat16),
        "emb_ln_g": jnp.ones((hidden,), jnp.float32),
        "emb_ln_b": jnp.zeros((hidden,), jnp.float32),
        "lm_dense_w": nrm(keys[2], (hidden, hidden)).astype(jnp.bfloat16),
        "lm_dense_b": jnp.zeros((hidden,), jnp.float32),
        "lm_ln_g": jnp.ones((hidden,), jnp.float32),
        "lm_ln_b": jnp.zeros((hidden,), jnp.float32),
        "lm_bias": jnp.zeros((vocab,), jnp.float32),
        "layers": [],
    }
    for l in range(n_layers):
        lk = jax.random.split(keys[4 + l], 6)
        wq = nrm(lk[0], (hidden, hidden))
        wk = nrm(lk[1], (hidden, hidden))
        wv = nrm(lk[2], (hidden, hidden))
        params["layers"].append({
            # Fused QKV weight; attention scale folded into the Q columns.
            "w_qkv": jnp.concatenate([wq * scale, wk, wv],
                                     axis=1).astype(jnp.bfloat16),
            "b_qkv": jnp.zeros((3 * hidden,), jnp.float32),
            "wo": nrm(lk[3], (hidden, hidden)).astype(jnp.bfloat16),
            "bo": jnp.zeros((hidden,), jnp.float32),
            "ln1_g": jnp.ones((hidden,), jnp.float32),
            "ln1_b": jnp.zeros((hidden,), jnp.float32),
            "w1": nrm(lk[4], (hidden, ffn)).astype(jnp.bfloat16),
            "b1": jnp.zeros((ffn,), jnp.float32),
            "w2": nrm(lk[5], (ffn, hidden)).astype(jnp.bfloat16),
            "b2": jnp.zeros((hidden,), jnp.float32),
            "ln2_g": jnp.ones((hidden,), jnp.float32),
            "ln2_b": jnp.zeros((hidden,), jnp.float32),
        })
    return params


def finalize_lm_head(params, vocab, hidden):
    """Tie decoder to the (label-word-initialized) embedding, cast to bf16,
    and pad the vocab axis to a multiple of 512 so the LM-head matmul always
    tiles with tn=512 (never an untiled full-V weight block)."""
    we = params["word_emb"]
    vp = ((vocab + 511) // 512) * 512
    dec = jnp.zeros((hidden, vp), jnp.bfloat16).at[:, :vocab].set(
        we.T.astype(jnp.bfloat16))
    bias_p = jnp.zeros((vp,), jnp.float32).at[:vocab].set(params["lm_bias"])
    params["word_emb"] = we.astype(jnp.bfloat16)
    params["lm_decoder_w"] = dec
    params["lm_bias_p"] = bias_p
    return params


def roberta_mlm_forward(params, arg, mask_arg, token_mask_indices, token_id,
                        label_mask, n_heads):
    B, S = arg.shape
    V = params["lm_bias"].shape[0]
    H = params["word_emb"].shape[1]
    M = B * S

    # Embeddings (token gather is host glue) + LayerNorm (Pallas), bf16 out.
    x = params["word_emb"][arg] + params["pos_emb"][:S][None, :, :]
    xf = layernorm(x.reshape(M, H), params["emb_ln_g"], params["emb_ln_b"])

    key_mask = mask_arg.astype(jnp.float32).reshape(B, 1, S)

    for layer in params["layers"]:
        qkv = linear(xf, layer["w_qkv"], layer["b_qkv"])               # (M, 3H) bf16
        ctx = attention(qkv.reshape(B, S, 3 * H), key_mask, n_heads)   # (B, S, H) bf16
        xf = linear_res_ln(ctx.reshape(M, H), layer["wo"], layer["bo"],
                           xf, layer["ln1_g"], layer["ln1_b"])
        f = linear(xf, layer["w1"], layer["b1"], activation="gelu")
        xf = linear_res_ln(f, layer["w2"], layer["b2"],
                           xf, layer["ln2_g"], layer["ln2_b"])

    # out_vocab[i] = lm_head(out_arg[i][token_mask_indices[i]])  — only the
    # masked rows go through the LM head (identical logits, far less work).
    h = xf.reshape(B, S, H)
    h_mask = h[jnp.arange(B), token_mask_indices]                      # (B, H) bf16
    h_mask = linear(h_mask, params["lm_dense_w"], params["lm_dense_b"],
                    activation="gelu")
    h_mask = layernorm(h_mask, params["lm_ln_g"], params["lm_ln_b"])
    # Padded-vocab decoder: f32 logits, output block itself is the accumulator.
    out_vocab = linear(h_mask, params["lm_decoder_w"], params["lm_bias_p"],
                       out_dtype=jnp.float32)                          # (B, VP)

    # out_ans = out_vocab[:, Token_id]; masked_fill(label_mask==1, -inf); argmax.
    K = token_id.shape[0]
    KP = max(128, ((K + 127) // 128) * 128)      # lane-dense candidate tile
    ans = out_vocab[:, token_id]                                       # (B, K)
    ans_p = jnp.full((B, KP), -jnp.inf, jnp.float32).at[:, :K].set(ans)
    lmask_p = jnp.ones((B, KP), jnp.int32).at[:, :K].set(label_mask.astype(jnp.int32))
    out_ans_p, pred = mask_argmax(ans_p, lmask_p)
    return pred[:, 0], out_ans_p[:, :K]


# ---------------------------------------------------------------------------
# Main
# ---------------------------------------------------------------------------

if __name__ == "__main__":
    # Small demo shapes (tile-friendly: H and 3H are multiples of 128).
    B, S, H, NH, L, FFN, V = 2, 16, 128, 4, 2, 256, 384
    key = jax.random.PRNGKey(0)
    kp, ka, km = jax.random.split(key, 3)

    params = init_params(kp, V, H, S, L, FFN, NH)

    # Emulate _init_label_word: each label-word embedding := mean of a few
    # "semantic" word embeddings (init-time, not part of forward).
    K = 8
    token_id = jnp.arange(8, 8 + K, dtype=jnp.int32)
    we = params["word_emb"]
    for j in range(K):
        sem_ids = jnp.array([20 + 2 * j, 21 + 2 * j], dtype=jnp.int32)
        we = we.at[token_id[j]].set(jnp.mean(we[sem_ids], axis=0))
    params["word_emb"] = we
    # Tied LM-head decoder weight: transposed + vocab-padded ONCE here.
    params = finalize_lm_head(params, V, H)

    arg = jax.random.randint(ka, (B, S), 0, V, dtype=jnp.int32)
    mask_arg = jnp.ones((B, S), jnp.int32).at[:, S - 2:].set(0)   # last 2 = padding
    token_mask_indices = jnp.array([3, 5], dtype=jnp.int32)
    label_mask = jax.random.randint(km, (B, K), 0, 2, dtype=jnp.int32)
    label_mask = label_mask.at[:, 0].set(0)                       # keep >=1 candidate

    pred_word, out_ans = roberta_mlm_forward(
        params, arg, mask_arg, token_mask_indices, token_id, label_mask, NH)
    jax.block_until_ready(out_ans)
    jax.block_until_ready(pred_word)

    pred_word = [int(p) for p in jax.device_get(pred_word)]       # mirrors .tolist()
    assert out_ans.shape == (B, K)
    assert len(pred_word) == B
    assert all(0 <= p < K for p in pred_word)

    # TODO(synk): pretrained roberta-base weights / HF tokenizer cannot be loaded
    # here; parameters are synthetic but the forward dataflow matches the module.
    print("KERNEL_OK")
</pallas_src>

<mosaic_0001>
module attributes {stable_mosaic.version = 11 : i64} {
  func.func @_layernorm_kernel(%arg0: i32, %arg1: memref<32x128xbf16, #tpu.memory_space<vmem>>, %arg2: memref<1x128xf32, #tpu.memory_space<vmem>>, %arg3: memref<1x128xf32, #tpu.memory_space<vmem>>, %arg4: memref<32x128xbf16, #tpu.memory_space<vmem>>) attributes {dimension_semantics = [#tpu.dimension_semantics<parallel>], iteration_bounds = array<i64: 1>, scalar_prefetch = 0 : i64, scratch_operands = 0 : i64, tpu.core_type = #tpu.core_type<tc>, window_params = [{transform_indices = @transform_0, window_bounds = array<i64: 32, 128>}, {pipeline_mode = #tpu.pipeline_mode<synchronous>, transform_indices = @transform_1, window_bounds = array<i64: 1, 128>}, {pipeline_mode = #tpu.pipeline_mode<synchronous>, transform_indices = @transform_2, window_bounds = array<i64: 1, 128>}, {transform_indices = @transform_3, window_bounds = array<i64: 32, 128>}]} {
    %c0 = arith.constant 0 : index
    %c0_0 = arith.constant 0 : index
    %0 = vector.load %arg1[%c0, %c0_0] : memref<32x128xbf16, #tpu.memory_space<vmem>>, vector<32x128xbf16>
    %1 = arith.extf %0 : vector<32x128xbf16> to vector<32x128xf32>
    %cst = arith.constant dense<0.000000e+00> : vector<32xf32>
    %2 = vector.multi_reduction <add>, %1, %cst [1] : vector<32x128xf32> to vector<32xf32>
    %3 = vector.shape_cast %2 : vector<32xf32> to vector<32x1xf32>
    %cst_1 = arith.constant 1.280000e+02 : f32
    %4 = vector.broadcast %cst_1 : f32 to vector<32x1xf32>
    %5 = arith.divf %3, %4 : vector<32x1xf32>
    %6 = vector.broadcast %5 : vector<32x1xf32> to vector<32x128xf32>
    %7 = arith.subf %1, %6 : vector<32x128xf32>
    %8 = arith.mulf %7, %7 : vector<32x128xf32>
    %cst_2 = arith.constant dense<0.000000e+00> : vector<32xf32>
    %9 = vector.multi_reduction <add>, %8, %cst_2 [1] : vector<32x128xf32> to vector<32xf32>
    %10 = vector.shape_cast %9 : vector<32xf32> to vector<32x1xf32>
    %cst_3 = arith.constant 1.280000e+02 : f32
    %11 = vector.broadcast %cst_3 : f32 to vector<32x1xf32>
    %12 = arith.divf %10, %11 : vector<32x1xf32>
    %13 = vector.broadcast %5 : vector<32x1xf32> to vector<32x128xf32>
    %14 = arith.subf %1, %13 : vector<32x128xf32>
    %cst_4 = arith.constant 9.99999974E-6 : f32
    %15 = vector.broadcast %cst_4 : f32 to vector<32x1xf32>
    %16 = arith.addf %12, %15 : vector<32x1xf32>
    %17 = math.rsqrt %16 : vector<32x1xf32>
    %18 = vector.broadcast %17 : vector<32x1xf32> to vector<32x128xf32>
    %19 = arith.mulf %14, %18 : vector<32x128xf32>
    %c0_5 = arith.constant 0 : index
    %c0_6 = arith.constant 0 : index
    %20 = vector.load %arg2[%c0_5, %c0_6] : memref<1x128xf32, #tpu.memory_space<vmem>>, vector<1x128xf32>
    %21 = vector.broadcast %20 : vector<1x128xf32> to vector<32x128xf32>
    %22 = arith.mulf %19, %21 : vector<32x128xf32>
    %c0_7 = arith.constant 0 : index
    %c0_8 = arith.constant 0 : index
    %23 = vector.load %arg3[%c0_7, %c0_8] : memref<1x128xf32, #tpu.memory_space<vmem>>, vector<1x128xf32>
    %24 = vector.broadcast %23 : vector<1x128xf32> to vector<32x128xf32>
    %25 = arith.addf %22, %24 : vector<32x128xf32>
    %26 = arith.truncf %25 : vector<32x128xf32> to vector<32x128xbf16>
    %c0_9 = arith.constant 0 : index
    %c0_10 = arith.constant 0 : index
    %27 = vector.load %arg4[%c0_9, %c0_10] : memref<32x128xbf16, #tpu.memory_space<vmem>>, vector<32x128xbf16>
    tpu.vector_store %arg4[%c0_9, %c0_10], %26 {strides = array<i32>} : memref<32x128xbf16, #tpu.memory_space<vmem>>, vector<32x128xbf16>,
    return
  }
  func.func @transform_0(%arg0: i32) -> (i32, i32) {
    %c0_i32 = arith.constant 0 : i32
    %c0_i32_0 = arith.constant 0 : i32
    return %arg0, %c0_i32 : i32, i32
  }
  func.func @transform_1(%arg0: i32) -> (i32, i32) {
    %c0_i32 = arith.constant 0 : i32
    %c0_i32_0 = arith.constant 0 : i32
    %c0_i32_1 = arith.constant 0 : i32
    return %c0_i32, %c0_i32_0 : i32, i32
  }
  func.func @transform_2(%arg0: i32) -> (i32, i32) {
    %c0_i32 = arith.constant 0 : i32
    %c0_i32_0 = arith.constant 0 : i32
    %c0_i32_1 = arith.constant 0 : i32
    return %c0_i32, %c0_i32_0 : i32, i32
  }
  func.func @transform_3(%arg0: i32) -> (i32, i32) {
    %c0_i32 = arith.constant 0 : i32
    %c0_i32_0 = arith.constant 0 : i32
    return %arg0, %c0_i32 : i32, i32
  }
}

</mosaic_0001>

<bundles_post_ra>
// kernel: tpu_custom_call.1
= control target key start
LH: loop header
LB: loop body
LE: loop exit
PB: predicated region body
PF: predicated region fallthrough
CT: control target
= control target key end

     0   :  { %8 = vsyncpa [#allocation3], 0  ;;  %s291_s0 = inlined_call_operand.hbm [shape: bf16[32,128], index: 0, kind: input, shape index: {}]   ;;  %s292_s1 = inlined_call_operand.vmem [shape: f32[1,128], index: 1, kind: input, shape index: {}]   ;;  %s293_s2 = inlined_call_operand.vmem [shape: f32[1,128], index: 2, kind: input, shape index: {}]   ;;  %s294_s3 = inlined_call_operand.hbm [shape: bf16[32,128], index: 3, kind: output, shape index: {}]  }
   0x1   :  { %9 = vsyncpa [#allocation4], 0  ;;  %s231_s12 = smov [#allocation2]   ;;  %s183_s16 = scalar_lea.hbm %s291_s0, 256 }
   0x2   :  { %s15_s13 = sshll.u32 %s231_s12, 4  ;;  %p184_p0 = scmp.ne.s32.totalorder %s291_s0, %s183_s16  ;;  %s16_s13 = int_to_ptr.vmem [resolvable:$true] %s15_s13 }
   0x3   :  { %p187_p1 = scmp.lt.u32.totalorder %s183_s16, %s291_s0 }
   0x5   :  { %p189_p2 = pnand %p187_p1, %p184_p0 }
   0x7   :  { %192 = shalt.err (!%p189_p2)
}
   0x8   :  { %s193_s21 = scalar_lea.vmem %s16_s13, 256  ;;  %p198_p4 = scmp.lt.s32.totalorder %s16_s13, %s16_s13 }
   0x9   :  { %p194_p3 = scmp.ne.s32.totalorder %s16_s13, %s193_s21  ;;  %p199_p5 = scmp.lt.s32.totalorder %s193_s21, %s193_s21 }
   0xb   :  { %p200_p6 = por %p199_p5, %p198_p4 }
   0xd   :  { %p201_p7 = pnand %p200_p6, %p194_p3 }
   0xf   :  { %204 = shalt.err (!%p201_p7)
}
  0x10   :  { %s232_s22 = smov 64   ;;  %s233_s23 = smov 4  }
  0x11   :  { %21 = dma.hbm_to_vmem [thread:$0]  %s291_s0, 256, %s16_s13, [#allocation3], %s232_s22, %s232_s22, %s233_s23  }
  0x12   :  { %227 = dma.done.wait [#allocation3], 256  }
  0x13   :  { %228 = vsyncadd [#allocation3], 4294967040  ;;  %v152_v0 = vld [vmem:[#allocation2] sm:$0xff]   ;;  %v169_v1 = vld [vmem:[#allocation2 + $0x8] sm:$0xff]   ;;  %s234_s29 = smov [#allocation5]  }
  0x14   :  { %v153_v2 = vunpack.c.l.bf16 %v152_v0  ;;  %v157_v3 = vunpack.c.l.bf16 %v169_v1  ;;  %v154_v4 = vunpack.c.h.bf16 %v152_v0  ;;  %v158_v5 = vunpack.c.h.bf16 %v169_v1  ;;  %v141_v36 = vld [vmem:[%s292_s1] ss:$0 sm:$0xff]  ;;  %s129_s30 = sshll.u32 %s234_s29, 4  ;;  %s130_s30 = int_to_ptr.vmem [resolvable:$true] %s129_s30 }
  0x15   :  { %v142_v42 = vld [vmem:[%s293_s2] ss:$0 sm:$0xff]  ;;  %s205_s1 = scalar_lea.vmem %s130_s30, 256  ;;  %p210_p9 = scmp.lt.s32.totalorder %s130_s30, %s130_s30 }
  0x16   :  { %37 = vadd.xlane.f32.xlu0 %v153_v2  ;;  %41 = vadd.xlane.f32.xlu1 %v157_v3  ;;  %p206_p8 = scmp.ne.s32.totalorder %s130_s30, %s205_s1  ;;  %p211_p10 = scmp.lt.s32.totalorder %s205_s1, %s205_s1 }
  0x18   :  { %p212_p11 = por %p211_p10, %p210_p9 }
  0x1a   :  { %39 = vadd.xlane.f32.xlu0 %v154_v4  ;;  %43 = vadd.xlane.f32.xlu1 %v158_v5  ;;  %p213_p12 = pnand %p212_p11, %p206_p8 }
  0xa3   :  { %v38_v6 = vpop.xlane.xlu0 %37  ;;  %v42_v7 = vpop.xlane.xlu1 %41 }
  0xa4   :  { %v46_v8 = vmul.f32 0.0078125, %v38_v6  ;;  %v48_v9 = vmul.f32 0.0078125, %v42_v7 }
  0xa6   :  { %v50_v10 = vsub.f32 %v153_v2, %v46_v8  ;;  %v52_v11 = vsub.f32 %v157_v3, %v48_v9 }
  0xa7   :  { %v40_v12 = vpop.xlane.xlu0 %39  ;;  %v44_v13 = vpop.xlane.xlu1 %43 }
  0xa8   :  { %v47_v14 = vmul.f32 0.0078125, %v40_v12  ;;  %v54_v15 = vmul.f32 %v50_v10, %v50_v10  ;;  %v49_v16 = vmul.f32 0.0078125, %v44_v13  ;;  %v56_v19 = vmul.f32 %v52_v11, %v52_v11 }
  0xaa   :  { %v51_v17 = vsub.f32 %v154_v4, %v47_v14  ;;  %58 = vadd.xlane.f32.xlu0 %v54_v15  ;;  %v53_v18 = vsub.f32 %v158_v5, %v49_v16 }
  0xac   :  { %v55_v20 = vmul.f32 %v51_v17, %v51_v17  ;;  %v57_v21 = vmul.f32 %v53_v18, %v53_v18 }
  0xae   :  { %62 = vadd.xlane.f32.xlu0 %v56_v19  ;;  %60 = vadd.xlane.f32.xlu1 %v55_v20 }
  0xb2   :  { %64 = vadd.xlane.f32.xlu1 %v57_v21 }
 0x137   :  { %v59_v22 = vpop.xlane.xlu0 %58 }
 0x138   :  { %v66_v23 = vmul.f32 0.0078125, %v59_v22 }
 0x13a   :  { %v70_v24 = vadd.f32 1e-05, %v66_v23 }
 0x13b   :  { %v61_v25 = vpop.xlane.xlu1 %60  ;;  %v63_v26 = vpop.xlane.xlu0 %62 }
 0x13c   :  { %175 = vrsqrt.f32 %v70_v24  ;;  %v67_v27 = vmul.f32 0.0078125, %v61_v25  ;;  %v68_v28 = vmul.f32 0.0078125, %v63_v26 }
 0x13e   :  { %v71_v29 = vadd.f32 1e-05, %v67_v27  ;;  %v72_v30 = vadd.f32 1e-05, %v68_v28 }
 0x13f   :  { %v65_v31 = vpop.xlane.xlu1 %64 }
 0x140   :  { %177 = vrsqrt.f32 %v71_v29  ;;  %v69_v32 = vmul.f32 0.0078125, %v65_v31 }
 0x141   :  { %179 = vrsqrt.f32 %v72_v30 }
 0x142   :  { %v73_v33 = vadd.f32 1e-05, %v69_v32 }
 0x144   :  { %181 = vrsqrt.f32 %v73_v33 }
 0x146   :  { %v176_v34 = vpop.eup %175 }
 0x147   :  { %v78_v35 = vmul.f32 %v176_v34, %v50_v10 }
 0x149   :  { %v89_v40 = vmul.f32 %v141_v36, %v78_v35 }
 0x14a   :  { %v178_v37 = vpop.eup %177 }
 0x14b   :  { %v180_v38 = vpop.eup %179  ;;  %v79_v39 = vmul.f32 %v178_v37, %v51_v17  ;;  %v100_v47 = vadd.f32 %v142_v42, %v89_v40 }
 0x14c   :  { %v80_v41 = vmul.f32 %v180_v38, %v52_v11 }
 0x14d   :  { %v90_v43 = vmul.f32 %v141_v36, %v79_v39 }
 0x14e   :  { %v182_v44 = vpop.eup %181  ;;  %v91_v46 = vmul.f32 %v141_v36, %v80_v41 }
 0x14f   :  { %v81_v45 = vmul.f32 %v182_v44, %v53_v18  ;;  %v101_v48 = vadd.f32 %v142_v42, %v90_v43 }
 0x150   :  { %v102_v51 = vadd.f32 %v142_v42, %v91_v46 }
 0x151   :  { %v92_v49 = vmul.f32 %v141_v36, %v81_v45  ;;  %v162_v50 = vpack.c.bf16 %v101_v48, %v100_v47 }
 0x153   :  { %v103_v52 = vadd.f32 %v142_v42, %v92_v49  ;;  %163 = vst [vmem:[#allocation5] sm:$0xff] %v162_v50  }
 0x155   :  { %v167_v53 = vpack.c.bf16 %v103_v52, %v102_v51 }
 0x157   :  { %170 = vst [vmem:[#allocation5 + $0x8] sm:$0xff] %v167_v53  }
 0x158   :  { %216 = shalt.err (!%p213_p12)
}
 0x159   :  { %s217_s5 = scalar_lea.hbm %s294_s3, 256 }
 0x15a   :  { %p218_p13 = scmp.ne.s32.totalorder %s294_s3, %s217_s5  ;;  %p221_p0 = scmp.lt.u32.totalorder %s217_s5, %s294_s3 }
 0x15c   :  { %p223_p1 = pnand %p221_p0, %p218_p13 }
 0x15e   :  { %226 = shalt.err (!%p223_p1)
}
 0x15f   :  { %135 = dma.vmem_to_hbm [thread:$0]  %s130_s30, 256, %s294_s3, [#allocation4], %s232_s22, %s232_s22, %s233_s23  }
 0x160   :  { %229 = dma.done.wait [#allocation4], 256  }
 0x161   :  { %230 = vsyncadd [#allocation4], 4294967040 }
 0x162   :  { %139 = vsyncpa [#allocation3], 1 }
 0x163   :  { %140 = vsyncpa [#allocation4], 1 }

</bundles_post_ra>
